<compile_context>
chip_gen: v7x
topology: tpu7x:2x2x1
jax: 0.10.0
libtpu: 0.0.40
codegen_flags: <defaults>
</compile_context>

<pallas_src>
import functools

import jax
import jax.numpy as jnp
from jax.experimental import pallas as pl
from jax.experimental.pallas import tpu as pltpu

_LANES = 128
_RAGGED_LANE_BLOCK = 128 * 1024  # elements per block on the (1, n) ragged path


def _clamp_kernel(x_ref, o_ref, *, max_val):
    """Elementwise clamp on one VMEM block."""
    v = x_ref[...]
    v = jnp.maximum(v, jnp.zeros((), dtype=v.dtype))
    if max_val is not None:
        v = jnp.minimum(v, jnp.asarray(max_val, dtype=v.dtype))
    o_ref[...] = v


@functools.lru_cache(maxsize=None)
def _block_and_vmem_bytes():
    """Generation-aware (block_bytes, vmem_limit_bytes)."""
    vmem_cap = 128 * 1024 * 1024
    try:
        info = pltpu.get_tpu_info()
        vmem_cap = int(getattr(info, "vmem_capacity_bytes", vmem_cap))
    except Exception:
        pass
    if vmem_cap <= 64 * 1024 * 1024:
        # v7x-class: 64 MiB physical VMEM per TensorCore -> smaller blocks,
        # keep ~24 MiB of headroom while still amortizing step overhead.
        return 6 * 1024 * 1024, 40 * 1024 * 1024
    # v5e / v6e: 128 MiB physical VMEM (scoped defaults 16 / 32 MiB).
    return 8 * 1024 * 1024, 48 * 1024 * 1024


def _choose_rows_tile(rows, itemsize, block_bytes):
    """Dtype-aware row tile: ~block_bytes per block, >= ~4 grid steps when possible."""
    packing = max(1, 4 // itemsize)          # f32 -> 1, bf16 -> 2, int8/fp8 -> 4
    sub_mult = 8 * packing                   # native packed sublane tile
    target_rows = (block_bytes // (_LANES * itemsize)) // sub_mult * sub_mult
    target_rows = max(sub_mult, target_rows)
    # >= 4 grid steps when the array allows it: >= 2 per TensorCore on dual-TC
    # chips (v7x) keeps prefetch/writeback overlapped.
    quarter = -(-rows // 4)
    quarter = -(-quarter // sub_mult) * sub_mult
    return min(target_rows, max(sub_mult, quarter))


def _clamp_rows128(x2d, max_val, rows_tile, vmem_limit):
    """x2d: (rows, 128); row-blocked ragged grid, contiguous DMA per block."""
    rows, lanes = x2d.shape
    kernel = functools.partial(_clamp_kernel, max_val=max_val)
    return pl.pallas_call(
        kernel,
        out_shape=jax.ShapeDtypeStruct((rows, lanes), x2d.dtype),
        grid=(pl.cdiv(rows, rows_tile),),
        in_specs=[pl.BlockSpec((rows_tile, lanes), lambda i: (i, 0))],
        out_specs=pl.BlockSpec((rows_tile, lanes), lambda i: (i, 0)),
        compiler_params=pltpu.CompilerParams(
            dimension_semantics=("parallel",),
            vmem_limit_bytes=vmem_limit,
        ),
    )(x2d)


def _clamp_lane_blocked(x1r, max_val, lane_block, vmem_limit):
    """x1r: (1, n) with n not a multiple of 128; lane-blocked, masked tail."""
    _, n = x1r.shape
    kernel = functools.partial(_clamp_kernel, max_val=max_val)
    return pl.pallas_call(
        kernel,
        out_shape=jax.ShapeDtypeStruct((1, n), x1r.dtype),
        grid=(pl.cdiv(n, lane_block),),
        in_specs=[pl.BlockSpec((1, lane_block), lambda i: (0, i))],
        out_specs=pl.BlockSpec((1, lane_block), lambda i: (0, i)),
        compiler_params=pltpu.CompilerParams(
            dimension_semantics=("parallel",),
            vmem_limit_bytes=vmem_limit,
        ),
    )(x1r)


@functools.partial(jax.jit, static_argnames=("max_val",))
def redirected_relu(x, max_val=None):
    """Forward of RedirectedReLU (max_val=None) / RedirectedReLU6 (max_val=6).

    Accepts any shape (e.g. NCHW); elementwise, shape/dtype preserving.
    Jitted so the flatten / pallas_call / reshape compile as one program and
    the reshapes stay zero-copy bitcasts.
    """
    orig_shape = x.shape
    n = x.size
    if n == 0:
        return x

    block_bytes, vmem_limit = _block_and_vmem_bytes()
    itemsize = jnp.dtype(x.dtype).itemsize
    flat = x.reshape(-1)

    if n % _LANES == 0:
        rows = n // _LANES
        x2d = flat.reshape(rows, _LANES)
        rows_tile = _choose_rows_tile(rows, itemsize, block_bytes)
        out2d = _clamp_rows128(x2d, max_val, rows_tile, vmem_limit)
        return out2d.reshape(orig_shape)

    # Non-lane-aligned flat size: no pad / slice round trip.  View as (1, n)
    # and lane-block with a masked ragged last block (single read + write).
    lane_block = min(_RAGGED_LANE_BLOCK, -(-n // _LANES) * _LANES)
    out1r = _clamp_lane_blocked(flat.reshape(1, n), max_val, lane_block, vmem_limit)
    return out1r.reshape(orig_shape)


class RedirectReLUsPallas:
    """JAX/Pallas mirror of RedirectReLUs(torch.nn.Sequential(...activations...)).

    `layers` is a sequence of strings in {"relu", "relu6"} describing the
    activation children of the wrapped Sequential (RedirectReLUs has no
    learnable parameters — it only swaps activation modules).  While
    `redirected=True` (the __init__ default; first 16 batches of epoch 0 in
    the original), the redirected variants are used; their forward is
    numerically identical to plain ReLU / ReLU6, so the whole stack of
    consecutive activations fuses into a single clamp kernel pass.
    """

    def __init__(self, layers=("relu",)):
        self.layers = tuple(layers)
        for layer in self.layers:
            if layer not in ("relu", "relu6"):
                raise ValueError(f"unsupported layer: {layer}")
        self.redirected = True  # matches the torch module's __init__ default

    def __call__(self, x):
        if not self.layers:
            return x
        # relu/relu6 compositions collapse to clamp(0, 6 if any relu6 else inf)
        max_val = 6.0 if any(l == "relu6" for l in self.layers) else None
        return redirected_relu(x, max_val=max_val)


if __name__ == "__main__":
    key = jax.random.PRNGKey(0)
    # NCHW activations, small shapes: batch=2, channels=4, spatial=16x16
    x = jax.random.normal(key, (2, 4, 16, 16), dtype=jnp.float32) * 4.0

    ref = jax.block_until_ready(jnp.maximum(x, 0.0))
    ref6 = jax.block_until_ready(jnp.clip(x, 0.0, 6.0))

    # ReLU path
    y = jax.block_until_ready(RedirectReLUsPallas(("relu",))(x))
    assert y.shape == x.shape and y.dtype == x.dtype
    assert jnp.allclose(y, ref), "mismatch vs reference ReLU"

    # ReLU6 path
    y6 = jax.block_until_ready(RedirectReLUsPallas(("relu6",))(x))
    assert jnp.allclose(y6, ref6), "mismatch vs reference ReLU6"

    # fused consecutive activations (relu -> relu6 == clamp(0, 6))
    yf = jax.block_until_ready(RedirectReLUsPallas(("relu", "relu6"))(x))
    assert jnp.allclose(yf, ref6), "mismatch vs fused relu+relu6"

    # bf16 path (exercises dtype-aware sublane tiling); clamp is value-preserving, so exact
    xb = x.astype(jnp.bfloat16)
    refb = jax.block_until_ready(jnp.maximum(xb, jnp.bfloat16(0)))
    yb = jax.block_until_ready(RedirectReLUsPallas(("relu",))(xb))
    assert yb.dtype == jnp.bfloat16 and jnp.array_equal(yb, refb), "mismatch vs bf16 ReLU"

    # non-lane-aligned shape (exercises the pad-free (1, n) lane-blocked ragged path)
    xo = jax.random.normal(jax.random.PRNGKey(1), (2, 3, 5, 7), dtype=jnp.float32) * 4.0
    refo = jax.block_until_ready(jnp.maximum(xo, 0.0))
    yo = jax.block_until_ready(RedirectReLUsPallas(("relu",))(xo))
    assert yo.shape == xo.shape and jnp.allclose(yo, refo), "mismatch on ragged shape"

    print("KERNEL_OK")
</pallas_src>

<mosaic_0001>
module attributes {stable_mosaic.version = 11 : i64} {
  func.func @_clamp_kernel(%arg0: i32, %arg1: memref<8x128xf32, #tpu.memory_space<vmem>>, %arg2: memref<8x128xf32, #tpu.memory_space<vmem>>) attributes {dimension_semantics = [#tpu.dimension_semantics<parallel>], iteration_bounds = array<i64: 2>, scalar_prefetch = 0 : i64, scratch_operands = 0 : i64, tpu.core_type = #tpu.core_type<tc>, window_params = [{transform_indices = @transform_0, window_bounds = array<i64: 8, 128>}, {transform_indices = @transform_1, window_bounds = array<i64: 8, 128>}]} {
    %c0 = arith.constant 0 : index
    %c0_0 = arith.constant 0 : index
    %0 = vector.load %arg1[%c0, %c0_0] : memref<8x128xf32, #tpu.memory_space<vmem>>, vector<8x128xf32>
    %cst = arith.constant 0.000000e+00 : f32
    %1 = vector.broadcast %cst : f32 to vector<8x128xf32>
    %2 = arith.maximumf %0, %1 : vector<8x128xf32>
    %c0_1 = arith.constant 0 : index
    %c0_2 = arith.constant 0 : index
    %3 = vector.load %arg2[%c0_1, %c0_2] : memref<8x128xf32, #tpu.memory_space<vmem>>, vector<8x128xf32>
    tpu.vector_store %arg2[%c0_1, %c0_2], %2 {strides = array<i32>} : memref<8x128xf32, #tpu.memory_space<vmem>>, vector<8x128xf32>,
    return
  }
  func.func @transform_0(%arg0: i32) -> (i32, i32) {
    %c0_i32 = arith.constant 0 : i32
    %c0_i32_0 = arith.constant 0 : i32
    return %arg0, %c0_i32 : i32, i32
  }
  func.func @transform_1(%arg0: i32) -> (i32, i32) {
    %c0_i32 = arith.constant 0 : i32
    %c0_i32_0 = arith.constant 0 : i32
    return %arg0, %c0_i32 : i32, i32
  }
}

</mosaic_0001>

<bundles_post_ra>
// kernel: redirected_relu.1
= control target key start
LH: loop header
LB: loop body
LE: loop exit
PB: predicated region body
PF: predicated region fallthrough
CT: control target
= control target key end

     0   :  { %s189_s6 = smov 0   ;;  %s209_s0 = inlined_call_operand.vmem [shape: f32[16,128], index: 0, kind: input, shape index: {}]   ;;  %s210_s1 = inlined_call_operand.vmem [shape: f32[16,128], index: 1, kind: output, shape index: {}]  }
   0x1 LB: > { %s168_s7 = sadd.s32 4294967295, %s191_s6   ;;  %p172_p0 = scmp.ge.s32.totalorder %s191_s6, 1  ;;  %s191_s6 = sphi %s189_s6, %s11_s6  }
   0x2   : > { %p86_p1 = scmp.lt.s32.totalorder %s191_s6, 3 }
   0x4   : > { %p87_p2 = pnand %p172_p0, %p86_p1 }
   0x5   : > { %p104_p3 = scmp.lt.s32.totalorder (!%p87_p2), %s168_s7, 1 }
   0x6   : > { %90 = sbr.rel (%p87_p2) target bundleno = 20 (0x14), region = 24 }
   0xd   : > { %s212_s7 = smov (!%p104_p3, %s168_s7), 1 }
   0xe   : > { %s173_s8 = sshll.u32 %s212_s7, 3 }
   0xf   : > { %s107_s11 = scalar_lea.vmem %s209_s0, %s173_s8  ;;  %s111_s14 = scalar_lea.vmem %s210_s1, %s173_s8 }
  0x10   : > { %v112_v0 = vld [vmem:[%s107_s11] sm:$0xff] }
  0x11   : > { %v113_v1 = vmax.f32 %v112_v0, 0.0 }
  0x13   : > { %114 = vst [vmem:[%s111_s14] sm:$0xff] %v113_v1 }
  0x14 PF: > { %s11_s6 = sadd.s32 1, %s191_s6  }
  0x15   : > { %p8_p4 = scmp.ge.s32.totalorder %s11_s6, 4  }
  0x17   :  { %10 = sbr.rel (!%p8_p4) target bundleno = 1 (0x1), region = 54 }

</bundles_post_ra>
